<compile_context>
chip_gen: v7x
topology: tpu7x:2x2x1
jax: 0.10.0
libtpu: 0.0.40
codegen_flags: <defaults>
</compile_context>

<pallas_src>
import functools

import jax
import jax.numpy as jnp
import numpy as np
from jax import lax
from jax.experimental import pallas as pl
from jax.experimental.pallas import tpu as pltpu


# ----------------------------------------------------------------------------
# Fused kernel: source layer + classifier head + all Particul detectors.
# One grid step = one sample; everything stays resident in VMEM.
# ----------------------------------------------------------------------------
def _fused_kernel(x_ref, wf_ref, bf_ref, wdt_ref, bd_ref, mu_ref, isg_ref,
                  wc_ref, bc_ref, logits_ref, amaps_ref, conf_ref):
    # x_ref   : (1, HW, Cin) bf16      wf_ref : (Cin, D) bf16   bf_ref : (1, D) f32
    # wdt_ref : (CP, D) bf16 (detector weight, pre-transposed)
    # bd/mu/isg_ref : (CP, 1) f32      wc_ref : (D, ncls) bf16  bc_ref : (1, ncls) f32
    # logits_ref : (1, 1, ncls)  amaps_ref : (1, CP, HW)  conf_ref : (1, CP, 1)
    x = x_ref[0]                                                   # (HW, Cin)

    # --- classifier "source" layer: 1x1 conv + bias + ReLU (f32 accumulation)
    f32 = jnp.dot(x, wf_ref[...], preferred_element_type=jnp.float32)
    f32 = jnp.maximum(f32 + bf_ref[...], 0.0)                      # (HW, D) f32
    f = f32.astype(jnp.bfloat16)

    # --- Particul detectors: act[cp, hw] = sum_d wdT[cp, d] * f[hw, d]
    #     A @ B^T form -> result is (CP, HW): lane-dense over HW, no transpose.
    act = lax.dot_general(wdt_ref[...], f, (((1,), (1,)), ((), ())),
                          preferred_element_type=jnp.float32) + bd_ref[...]
    amax = jnp.max(act, axis=1, keepdims=True)                     # (CP, 1)
    e = jnp.exp(act - amax)
    inv_den = pl.reciprocal(jnp.sum(e, axis=1, keepdims=True), approx=True)
    amaps_ref[0] = e * inv_den                                     # spatial softmax

    # per-pattern confidence: calibrated logistic CDF of the max activation
    conf_ref[0] = jax.nn.sigmoid((amax - mu_ref[...]) * isg_ref[...])

    # --- classifier head: GAP + linear, as mean_hw(f @ wc) (no M=1 matmul)
    cls = jnp.dot(f, wc_ref[...], preferred_element_type=jnp.float32)  # (HW, ncls)
    logits_ref[0] = jnp.mean(cls, axis=0, keepdims=True) + bc_ref[...]


# ----------------------------------------------------------------------------
# Wrapper
# ----------------------------------------------------------------------------
@functools.partial(jax.jit, static_argnames=("nclasses", "npatterns"))
def classifier_with_particul_od2(x_nchw, params, *, nclasses, npatterns):
    """Forward pass, mode='logits+amaps'. Returns (logits, amaps, confidence)."""
    N, Cin, H, W = x_nchw.shape
    HW = H * W
    D = params["wf"].shape[1]
    CP = nclasses * npatterns

    # NCHW -> (N, HW, Cin); bf16 matmul operands (f32 accumulation in-kernel).
    x = jnp.transpose(x_nchw, (0, 2, 3, 1)).reshape(N, HW, Cin).astype(jnp.bfloat16)
    wf = params["wf"].astype(jnp.bfloat16)                 # (Cin, D)
    wdt = params["wd"].T.astype(jnp.bfloat16)              # (CP, D)
    wc = params["wc"].astype(jnp.bfloat16)                 # (D, ncls)
    bf = params["bf"].astype(jnp.float32)                  # (1, D)
    bd = params["bd"].reshape(CP, 1).astype(jnp.float32)
    mu = params["mu"].reshape(CP, 1).astype(jnp.float32)
    isg = (1.0 / params["sg"]).reshape(CP, 1).astype(jnp.float32)   # host-side 1/sigma
    bc = params["bc"].astype(jnp.float32)                  # (1, ncls)

    logits, amaps_cphw, conf = pl.pallas_call(
        _fused_kernel,
        out_shape=(
            jax.ShapeDtypeStruct((N, 1, nclasses), jnp.float32),
            jax.ShapeDtypeStruct((N, CP, HW), jnp.float32),
            jax.ShapeDtypeStruct((N, CP, 1), jnp.float32),
        ),
        grid=(N,),
        in_specs=[
            pl.BlockSpec((1, HW, Cin), lambda n: (n, 0, 0)),
            pl.BlockSpec((Cin, D), lambda n: (0, 0)),
            pl.BlockSpec((1, D), lambda n: (0, 0)),
            pl.BlockSpec((CP, D), lambda n: (0, 0)),
            pl.BlockSpec((CP, 1), lambda n: (0, 0)),
            pl.BlockSpec((CP, 1), lambda n: (0, 0)),
            pl.BlockSpec((CP, 1), lambda n: (0, 0)),
            pl.BlockSpec((D, nclasses), lambda n: (0, 0)),
            pl.BlockSpec((1, nclasses), lambda n: (0, 0)),
        ],
        out_specs=(
            pl.BlockSpec((1, 1, nclasses), lambda n: (n, 0, 0)),
            pl.BlockSpec((1, CP, HW), lambda n: (n, 0, 0)),
            pl.BlockSpec((1, CP, 1), lambda n: (n, 0, 0)),
        ),
        compiler_params=pltpu.CompilerParams(dimension_semantics=("parallel",)),
    )(x, wf, bf, wdt, bd, mu, isg, wc, bc)

    logits = logits.reshape(N, nclasses)
    # (N, C*P, H*W) reshapes directly to torch's (N, C, P, H, W) -- no transpose.
    amaps = amaps_cphw.reshape(N, nclasses, npatterns, H, W)
    confidence = conf.reshape(N, nclasses, npatterns)
    return logits, amaps, confidence


# ----------------------------------------------------------------------------
# Deterministic parameter construction + pure-JAX reference for checking
# ----------------------------------------------------------------------------
def make_params(key, cin, d, nclasses, npatterns):
    ks = jax.random.split(key, 8)
    cp = nclasses * npatterns
    return {
        "wf": 0.1 * jax.random.normal(ks[0], (cin, d), jnp.float32),
        "bf": 0.1 * jax.random.normal(ks[1], (1, d), jnp.float32),
        "wd": 0.1 * jax.random.normal(ks[2], (d, cp), jnp.float32),
        "bd": 0.1 * jax.random.normal(ks[3], (1, cp), jnp.float32),
        "mu": 0.1 * jax.random.normal(ks[4], (1, cp), jnp.float32),
        "sg": 0.5 + jnp.abs(jax.random.normal(ks[5], (1, cp), jnp.float32)),
        "wc": 0.1 * jax.random.normal(ks[6], (d, nclasses), jnp.float32),
        "bc": 0.1 * jax.random.normal(ks[7], (1, nclasses), jnp.float32),
    }


def reference_forward(x_nchw, params, nclasses, npatterns):
    """Pure-JAX reference with the same bf16-operand / f32-accumulate math."""
    N, Cin, H, W = x_nchw.shape
    HW = H * W
    x = jnp.transpose(x_nchw, (0, 2, 3, 1)).reshape(N, HW, Cin).astype(jnp.bfloat16)
    wf = params["wf"].astype(jnp.bfloat16)
    wd = params["wd"].astype(jnp.bfloat16)
    wc = params["wc"].astype(jnp.bfloat16)
    f = jnp.maximum(
        jnp.einsum("nhc,cd->nhd", x, wf, preferred_element_type=jnp.float32)
        + params["bf"], 0.0)
    fb = f.astype(jnp.bfloat16)
    act = (jnp.einsum("nhd,dp->nhp", fb, wd, preferred_element_type=jnp.float32)
           + params["bd"])
    amaps = jax.nn.softmax(act, axis=1)
    conf = jax.nn.sigmoid((jnp.max(act, axis=1) - params["mu"][0]) / params["sg"][0])
    cls = jnp.einsum("nhd,dk->nhk", fb, wc, preferred_element_type=jnp.float32)
    logits = jnp.mean(cls, axis=1) + params["bc"]
    amaps = jnp.transpose(
        amaps.reshape(N, H, W, nclasses, npatterns), (0, 3, 4, 1, 2))
    return logits, amaps, conf.reshape(N, nclasses, npatterns)


if __name__ == "__main__":
    N, Cin, H, W = 2, 4, 16, 16
    D = 32            # feature channels (nchans)
    NCLASSES = 4
    NPATTERNS = 3

    key = jax.random.PRNGKey(0)
    kx, kp = jax.random.split(key)
    x = jax.random.normal(kx, (N, Cin, H, W), jnp.float32)
    params = make_params(kp, Cin, D, NCLASSES, NPATTERNS)

    logits, amaps, conf = classifier_with_particul_od2(
        x, params, nclasses=NCLASSES, npatterns=NPATTERNS)
    jax.block_until_ready((logits, amaps, conf))

    r_logits, r_amaps, r_conf = reference_forward(x, params, NCLASSES, NPATTERNS)
    assert logits.shape == (N, NCLASSES)
    assert amaps.shape == (N, NCLASSES, NPATTERNS, H, W)
    assert conf.shape == (N, NCLASSES, NPATTERNS)
    np.testing.assert_allclose(np.asarray(logits), np.asarray(r_logits),
                               atol=2e-3, rtol=2e-3)
    np.testing.assert_allclose(np.asarray(amaps), np.asarray(r_amaps),
                               atol=2e-3, rtol=2e-3)
    np.testing.assert_allclose(np.asarray(conf), np.asarray(r_conf),
                               atol=2e-3, rtol=2e-3)

    print("KERNEL_OK")
</pallas_src>

<mosaic_0001>
module attributes {stable_mosaic.version = 11 : i64} {
  func.func @_fused_kernel(%arg0: i32, %arg1: memref<1x256x4xbf16, #tpu.memory_space<vmem>>, %arg2: memref<4x32xbf16, #tpu.memory_space<vmem>>, %arg3: memref<1x32xf32, #tpu.memory_space<vmem>>, %arg4: memref<12x32xbf16, #tpu.memory_space<vmem>>, %arg5: memref<12x1xf32, #tpu.memory_space<vmem>>, %arg6: memref<12x1xf32, #tpu.memory_space<vmem>>, %arg7: memref<12x1xf32, #tpu.memory_space<vmem>>, %arg8: memref<32x4xbf16, #tpu.memory_space<vmem>>, %arg9: memref<1x4xf32, #tpu.memory_space<vmem>>, %arg10: memref<1x1x4xf32, #tpu.memory_space<vmem>>, %arg11: memref<1x12x256xf32, #tpu.memory_space<vmem>>, %arg12: memref<1x12x1xf32, #tpu.memory_space<vmem>>) attributes {dimension_semantics = [#tpu.dimension_semantics<parallel>], iteration_bounds = array<i64: 2>, scalar_prefetch = 0 : i64, scratch_operands = 0 : i64, tpu.core_type = #tpu.core_type<tc>, window_params = [{transform_indices = @transform_0, window_bounds = array<i64: 1, 256, 4>}, {pipeline_mode = #tpu.pipeline_mode<synchronous>, transform_indices = @transform_1, window_bounds = array<i64: 4, 32>}, {pipeline_mode = #tpu.pipeline_mode<synchronous>, transform_indices = @transform_2, window_bounds = array<i64: 1, 32>}, {pipeline_mode = #tpu.pipeline_mode<synchronous>, transform_indices = @transform_3, window_bounds = array<i64: 12, 32>}, {pipeline_mode = #tpu.pipeline_mode<synchronous>, transform_indices = @transform_4, window_bounds = array<i64: 12, 1>}, {pipeline_mode = #tpu.pipeline_mode<synchronous>, transform_indices = @transform_5, window_bounds = array<i64: 12, 1>}, {pipeline_mode = #tpu.pipeline_mode<synchronous>, transform_indices = @transform_6, window_bounds = array<i64: 12, 1>}, {pipeline_mode = #tpu.pipeline_mode<synchronous>, transform_indices = @transform_7, window_bounds = array<i64: 32, 4>}, {pipeline_mode = #tpu.pipeline_mode<synchronous>, transform_indices = @transform_8, window_bounds = array<i64: 1, 4>}, {transform_indices = @transform_9, window_bounds = array<i64: 1, 1, 4>}, {transform_indices = @transform_10, window_bounds = array<i64: 1, 12, 256>}, {transform_indices = @transform_11, window_bounds = array<i64: 1, 12, 1>}]} {
    %c0 = arith.constant 0 : index
    %c0_0 = arith.constant 0 : index
    %c0_1 = arith.constant 0 : index
    %0 = vector.load %arg1[%c0, %c0_0, %c0_1] : memref<1x256x4xbf16, #tpu.memory_space<vmem>>, vector<1x256x4xbf16>
    %1 = vector.shape_cast %0 : vector<1x256x4xbf16> to vector<256x4xbf16>
    %c0_2 = arith.constant 0 : index
    %c0_3 = arith.constant 0 : index
    %2 = vector.load %arg2[%c0_2, %c0_3] : memref<4x32xbf16, #tpu.memory_space<vmem>>, vector<4x32xbf16>
    %cst = arith.constant dense<0.000000e+00> : vector<256x32xf32>
    %3 = tpu.matmul %1, %2, %cst {dimension_numbers = #tpu.dot_dimension_numbers<[1], [0], [0], [1], [0, 0, 1, 1], [], []>} : vector<256x4xbf16>, vector<4x32xbf16>, vector<256x32xf32> -> vector<256x32xf32>
    %c0_4 = arith.constant 0 : index
    %c0_5 = arith.constant 0 : index
    %4 = vector.load %arg3[%c0_4, %c0_5] : memref<1x32xf32, #tpu.memory_space<vmem>>, vector<1x32xf32>
    %5 = vector.broadcast %4 : vector<1x32xf32> to vector<256x32xf32>
    %6 = arith.addf %3, %5 : vector<256x32xf32>
    %cst_6 = arith.constant 0.000000e+00 : f32
    %7 = vector.broadcast %cst_6 : f32 to vector<256x32xf32>
    %8 = arith.maximumf %6, %7 : vector<256x32xf32>
    %9 = arith.truncf %8 : vector<256x32xf32> to vector<256x32xbf16>
    %c0_7 = arith.constant 0 : index
    %c0_8 = arith.constant 0 : index
    %10 = vector.load %arg4[%c0_7, %c0_8] : memref<12x32xbf16, #tpu.memory_space<vmem>>, vector<12x32xbf16>
    %cst_9 = arith.constant dense<0.000000e+00> : vector<12x256xf32>
    %11 = tpu.matmul %10, %9, %cst_9 {dimension_numbers = #tpu.dot_dimension_numbers<[1], [1], [0], [0], [0, 0, 1, 0], [], []>} : vector<12x32xbf16>, vector<256x32xbf16>, vector<12x256xf32> -> vector<12x256xf32>
    %c0_10 = arith.constant 0 : index
    %c0_11 = arith.constant 0 : index
    %12 = vector.load %arg5[%c0_10, %c0_11] : memref<12x1xf32, #tpu.memory_space<vmem>>, vector<12x1xf32>
    %13 = vector.broadcast %12 : vector<12x1xf32> to vector<12x256xf32>
    %14 = arith.addf %11, %13 : vector<12x256xf32>
    %cst_12 = arith.constant dense<0xFF800000> : vector<12xf32>
    %15 = vector.multi_reduction <maximumf>, %14, %cst_12 [1] : vector<12x256xf32> to vector<12xf32>
    %16 = vector.shape_cast %15 : vector<12xf32> to vector<12x1xf32>
    %17 = vector.broadcast %16 : vector<12x1xf32> to vector<12x256xf32>
    %18 = arith.subf %14, %17 : vector<12x256xf32>
    %19 = math.exp %18 : vector<12x256xf32>
    %cst_13 = arith.constant dense<0.000000e+00> : vector<12xf32>
    %20 = vector.multi_reduction <add>, %19, %cst_13 [1] : vector<12x256xf32> to vector<12xf32>
    %21 = vector.shape_cast %20 : vector<12xf32> to vector<12x1xf32>
    %22 = tpu.reciprocal %21 {approx = true} : vector<12x1xf32> -> vector<12x1xf32>
    %23 = vector.broadcast %22 : vector<12x1xf32> to vector<12x256xf32>
    %24 = arith.mulf %19, %23 : vector<12x256xf32>
    %c0_14 = arith.constant 0 : index
    %c0_15 = arith.constant 0 : index
    %c0_16 = arith.constant 0 : index
    %25 = vector.load %arg11[%c0_14, %c0_15, %c0_16] : memref<1x12x256xf32, #tpu.memory_space<vmem>>, vector<1x12x256xf32>
    %26 = vector.shape_cast %25 : vector<1x12x256xf32> to vector<12x256xf32>
    %27 = vector.shape_cast %24 : vector<12x256xf32> to vector<1x12x256xf32>
    tpu.vector_store %arg11[%c0_14, %c0_15, %c0_16], %27 {strides = array<i32>} : memref<1x12x256xf32, #tpu.memory_space<vmem>>, vector<1x12x256xf32>,
    %c0_17 = arith.constant 0 : index
    %c0_18 = arith.constant 0 : index
    %28 = vector.load %arg6[%c0_17, %c0_18] : memref<12x1xf32, #tpu.memory_space<vmem>>, vector<12x1xf32>
    %29 = arith.subf %16, %28 : vector<12x1xf32>
    %c0_19 = arith.constant 0 : index
    %c0_20 = arith.constant 0 : index
    %30 = vector.load %arg7[%c0_19, %c0_20] : memref<12x1xf32, #tpu.memory_space<vmem>>, vector<12x1xf32>
    %31 = arith.mulf %29, %30 : vector<12x1xf32>
    %32 = arith.negf %31 : vector<12x1xf32>
    %33 = math.exp %32 : vector<12x1xf32>
    %cst_21 = arith.constant 1.000000e+00 : f32
    %34 = vector.broadcast %cst_21 : f32 to vector<12x1xf32>
    %35 = arith.addf %34, %33 : vector<12x1xf32>
    %36 = arith.divf %34, %35 : vector<12x1xf32>
    %c0_22 = arith.constant 0 : index
    %c0_23 = arith.constant 0 : index
    %c0_24 = arith.constant 0 : index
    %37 = vector.load %arg12[%c0_22, %c0_23, %c0_24] : memref<1x12x1xf32, #tpu.memory_space<vmem>>, vector<1x12x1xf32>
    %38 = vector.shape_cast %37 : vector<1x12x1xf32> to vector<12x1xf32>
    %39 = vector.shape_cast %36 : vector<12x1xf32> to vector<1x12x1xf32>
    tpu.vector_store %arg12[%c0_22, %c0_23, %c0_24], %39 {strides = array<i32>} : memref<1x12x1xf32, #tpu.memory_space<vmem>>, vector<1x12x1xf32>,
    %c0_25 = arith.constant 0 : index
    %c0_26 = arith.constant 0 : index
    %40 = vector.load %arg8[%c0_25, %c0_26] : memref<32x4xbf16, #tpu.memory_space<vmem>>, vector<32x4xbf16>
    %cst_27 = arith.constant dense<0.000000e+00> : vector<256x4xf32>
    %41 = tpu.matmul %9, %40, %cst_27 {dimension_numbers = #tpu.dot_dimension_numbers<[1], [0], [0], [1], [0, 0, 1, 1], [], []>} : vector<256x32xbf16>, vector<32x4xbf16>, vector<256x4xf32> -> vector<256x4xf32>
    %cst_28 = arith.constant dense<0.000000e+00> : vector<4xf32>
    %42 = vector.multi_reduction <add>, %41, %cst_28 [0] : vector<256x4xf32> to vector<4xf32>
    %43 = vector.shape_cast %42 : vector<4xf32> to vector<1x4xf32>
    %cst_29 = arith.constant 2.560000e+02 : f32
    %44 = vector.broadcast %cst_29 : f32 to vector<1x4xf32>
    %45 = arith.divf %43, %44 : vector<1x4xf32>
    %c0_30 = arith.constant 0 : index
    %c0_31 = arith.constant 0 : index
    %46 = vector.load %arg9[%c0_30, %c0_31] : memref<1x4xf32, #tpu.memory_space<vmem>>, vector<1x4xf32>
    %47 = arith.addf %45, %46 : vector<1x4xf32>
    %c0_32 = arith.constant 0 : index
    %c0_33 = arith.constant 0 : index
    %c0_34 = arith.constant 0 : index
    %48 = vector.load %arg10[%c0_32, %c0_33, %c0_34] : memref<1x1x4xf32, #tpu.memory_space<vmem>>, vector<1x1x4xf32>
    %49 = vector.shape_cast %48 : vector<1x1x4xf32> to vector<1x4xf32>
    %50 = vector.shape_cast %47 : vector<1x4xf32> to vector<1x1x4xf32>
    tpu.vector_store %arg10[%c0_32, %c0_33, %c0_34], %50 {strides = array<i32>} : memref<1x1x4xf32, #tpu.memory_space<vmem>>, vector<1x1x4xf32>,
    return
  }
  func.func @transform_0(%arg0: i32) -> (i32, i32, i32) {
    %c0_i32 = arith.constant 0 : i32
    %c0_i32_0 = arith.constant 0 : i32
    %c0_i32_1 = arith.constant 0 : i32
    return %arg0, %c0_i32, %c0_i32_0 : i32, i32, i32
  }
  func.func @transform_1(%arg0: i32) -> (i32, i32) {
    %c0_i32 = arith.constant 0 : i32
    %c0_i32_0 = arith.constant 0 : i32
    %c0_i32_1 = arith.constant 0 : i32
    return %c0_i32, %c0_i32_0 : i32, i32
  }
  func.func @transform_2(%arg0: i32) -> (i32, i32) {
    %c0_i32 = arith.constant 0 : i32
    %c0_i32_0 = arith.constant 0 : i32
    %c0_i32_1 = arith.constant 0 : i32
    return %c0_i32, %c0_i32_0 : i32, i32
  }
  func.func @transform_3(%arg0: i32) -> (i32, i32) {
    %c0_i32 = arith.constant 0 : i32
    %c0_i32_0 = arith.constant 0 : i32
    %c0_i32_1 = arith.constant 0 : i32
    return %c0_i32, %c0_i32_0 : i32, i32
  }
  func.func @transform_4(%arg0: i32) -> (i32, i32) {
    %c0_i32 = arith.constant 0 : i32
    %c0_i32_0 = arith.constant 0 : i32
    %c0_i32_1 = arith.constant 0 : i32
    return %c0_i32, %c0_i32_0 : i32, i32
  }
  func.func @transform_5(%arg0: i32) -> (i32, i32) {
    %c0_i32 = arith.constant 0 : i32
    %c0_i32_0 = arith.constant 0 : i32
    %c0_i32_1 = arith.constant 0 : i32
    return %c0_i32, %c0_i32_0 : i32, i32
  }
  func.func @transform_6(%arg0: i32) -> (i32, i32) {
    %c0_i32 = arith.constant 0 : i32
    %c0_i32_0 = arith.constant 0 : i32
    %c0_i32_1 = arith.constant 0 : i32
    return %c0_i32, %c0_i32_0 : i32, i32
  }
  func.func @transform_7(%arg0: i32) -> (i32, i32) {
    %c0_i32 = arith.constant 0 : i32
    %c0_i32_0 = arith.constant 0 : i32
    %c0_i32_1 = arith.constant 0 : i32
    return %c0_i32, %c0_i32_0 : i32, i32
  }
  func.func @transform_8(%arg0: i32) -> (i32, i32) {
    %c0_i32 = arith.constant 0 : i32
    %c0_i32_0 = arith.constant 0 : i32
    %c0_i32_1 = arith.constant 0 : i32
    return %c0_i32, %c0_i32_0 : i32, i32
  }
  func.func @transform_9(%arg0: i32) -> (i32, i32, i32) {
    %c0_i32 = arith.constant 0 : i32
    %c0_i32_0 = arith.constant 0 : i32
    %c0_i32_1 = arith.constant 0 : i32
    return %arg0, %c0_i32, %c0_i32_0 : i32, i32, i32
  }
  func.func @transform_10(%arg0: i32) -> (i32, i32, i32) {
    %c0_i32 = arith.constant 0 : i32
    %c0_i32_0 = arith.constant 0 : i32
    %c0_i32_1 = arith.constant 0 : i32
    return %arg0, %c0_i32, %c0_i32_0 : i32, i32, i32
  }
  func.func @transform_11(%arg0: i32) -> (i32, i32, i32) {
    %c0_i32 = arith.constant 0 : i32
    %c0_i32_0 = arith.constant 0 : i32
    %c0_i32_1 = arith.constant 0 : i32
    return %arg0, %c0_i32, %c0_i32_0 : i32, i32, i32
  }
}

</mosaic_0001>

<bundles_post_ra>
// kernel: classifier_with_particul_od2.1
= control target key start
LH: loop header
LB: loop body
LE: loop exit
PB: predicated region body
PF: predicated region fallthrough
CT: control target
= control target key end

     0   :  { %s2087_s0 = inlined_call_operand.vmem [shape: bf16[2,256,4], index: 0, kind: input, shape index: {}]   ;;  %s2088_s1 = inlined_call_operand.vmem [shape: bf16[4,32], index: 1, kind: input, shape index: {}]   ;;  %s2089_s2 = inlined_call_operand.vmem [shape: f32[1,32], index: 2, kind: input, shape index: {}]   ;;  %s2090_s3 = inlined_call_operand.vmem [shape: bf16[12,32], index: 3, kind: input, shape index: {}]   ;;  %s2091_s4 = inlined_call_operand.vmem [shape: f32[12,1], index: 4, kind: input, shape index: {}]   ;;  %s2092_s5 = inlined_call_operand.vmem [shape: f32[12,1], index: 5, kind: input, shape index: {}]   ;;  %s2093_s6 = inlined_call_operand.vmem [shape: f32[12,1], index: 6, kind: input, shape index: {}]   ;;  %s2094_s7 = inlined_call_operand.vmem [shape: bf16[32,4], index: 7, kind: input, shape index: {}]   ;;  %s2095_s8 = inlined_call_operand.vmem [shape: f32[1,4], index: 8, kind: input, shape index: {}]   ;;  %s2096_s9 = inlined_call_operand.hbm [shape: f32[2,1,4], index: 9, kind: output, shape index: {0}]   ;;  %s2097_s10 = inlined_call_operand.vmem [shape: f32[2,12,256], index: 10, kind: output, shape index: {1}]   ;;  %s2098_s11 = inlined_call_operand.vmem [shape: f32[2,12,1], index: 11, kind: output, shape index: {2}]  }
   0x1   :  { %2100 = sst [smem:[#allocation5_spill]] %s2087_s0 }
   0x2   :  { %2101 = sst [smem:[#allocation6_spill]] %s2088_s1 }
   0x3   :  { %2102 = sst [smem:[#allocation7_spill]] %s2089_s2 }
   0x4   :  { %2103 = sst [smem:[#allocation8_spill]] %s2090_s3 }
   0x5   :  { %17 = vsyncpa [#allocation3], 0 }
   0x6   :  { %19 = vsyncpa [#allocation3 + $0x1], 0  ;;  %s1764_s17 = smov 0   ;;  %s1766_s18 = smov 0  }
   0x7   :  { %s1768_s19 = smov 0   ;;  %s1770_s20 = smov 0  }
   0x8 LB: > { %s1785_s21 = sadd.s32 4294967295, %s1700_s20   ;;  %s1355_s22 = sadd.s32 4294967294, %s1700_s20   ;;  %s1700_s20 = sphi %s1770_s20, %s2114_s20   ;;  %s1696_s19 = sphi %s1768_s19, %s2113_s19   ;;  %s1692_s18 = sphi %s1766_s18, %s2112_s18   ;;  %s1688_s17 = sphi %s1764_s17, %s2111_s17  }
   0x9   : > { %s1789_s23 = sadd.s32 1, %s1700_s20   ;;  %s226_s24 = sadd.s32 1, %s1696_s19 }
   0xa   : > { %s223_s25 = ssub.s32 %s1700_s20, %s1789_s23  ;;  %p236_p0 = scmp.ne.s32.totalorder %s1696_s19, %s1692_s18 }
   0xb   : > { %p224_p1 = scmp.eq.s32.totalorder %s223_s25, 0  ;;  %p237_p2 = scmp.eq.s32.totalorder %s1785_s21, 1 }
   0xc   : > { %p242_p3 = scmp.ne.s32.totalorder %s1692_s18, %s1688_s17  ;;  %p243_p4 = scmp.eq.s32.totalorder %s1355_s22, 1 }
   0xd   : > { %s1800_s26 = scalar_select %p224_p1, %s1696_s19, %s226_s24  }
   0xe   : > { %p1802_p5 = por %p237_p2, %p236_p0  ;;  %p1806_p6 = por %p243_p4, %p242_p3 }
   0xf   : > { %p1358_p7 = scmp.ge.s32.totalorder %s1700_s20, 1  ;;  %p345_p8 = scmp.lt.s32.totalorder %s1700_s20, 3 }
  0x11   : > { %p346_p9 = pnand %p1358_p7, %p345_p8 }
  0x12   : > { %s2106_s1 = sld [smem:[#allocation6_spill]] (!%p346_p9)  ;;  %vm579_vm0 = vcmask (!%p346_p9), 1041408   ;;  %p394_p10 = scmp.lt.s32.totalorder (!%p346_p9), %s1785_s21, 1  ;;  %vm530_vm1 = vcmask (!%p346_p9), 31744   ;;  %v1615_v18 = vld [vmem:[%s2094_s7] sm:$0xff] (!%p346_p9)   ;;  %v1616_v19 = vld [vmem:[%s2094_s7 + $0x8] sm:$0xff] (!%p346_p9)  }
  0x13   : > { %349 = sbr.rel (%p346_p9) target bundleno = 889 (0x379), region = 56  ;;  %s2107_s0 = sld [smem:[#allocation5_spill]] (!%p346_p9)  ;;  %1513 = vmatprep.subr.bf16.mxu0 (!%p346_p9), %v1615_v18  ;;  %vm811_vm2 = vcmask (!%p346_p9), 261120   ;;  %v795_v21 = vld [vmem:[%s2091_s4 + $0x8] sm:$0xf] (!%p346_p9)  ;;  %v1702_v22 = vmov (!%p346_p9), 0  }
  0x14   : > { %1514 = vmatpush3.bf16.msra.mxu0 (!%p346_p9), %v1615_v18  ;;  %s2108_s3 = sld [smem:[#allocation8_spill]] (!%p346_p9)  ;;  %1598 = vset.pattern.permute.xlu0 (!%p346_p9), %v1702_v22  ;;  %v794_v23 = vld [vmem:[%s2091_s4] sm:$0xff] (!%p346_p9)  ;;  %s2109_s2 = sld [smem:[#allocation7_spill]] (!%p346_p9)  ;;  %vm1219_vm3 = vcmask (!%p346_p9), 24576   ;;  %vm909_vm4 = vcmask (!%p346_p9), 1043456   ;;  %vm967_vm5 = vcmask (!%p346_p9), 3072  }
  0x15   : > { %1515 = vmatprep.subr.bf16.mxu0 (!%p346_p9), %v1616_v19  ;;  %803 = vperm.xlu0 (!%p346_p9), %1598, %v795_v21   ;;  %s2099_s29 = sand.u32 (!%p346_p9), 1, %s1692_s18   ;;  %vm965_vm6 = vcmask (!%p346_p9), 7168   ;;  %s1420_s30 = sshll.u32 (!%p346_p9), %s1785_s21, 4 }
  0x16   : > { %s2017_s14 = scalar_lea.vmem (!%p346_p9), [#allocation2], %s2099_s29 }
  0x18   : > { %v442_v0 = vld [vmem:[%s2106_s1] sm:$0x3] (!%p346_p9)  ;;  %1516 = vmatpush3.bf16.msra.mxu0 (!%p346_p9), %v1616_v19  ;;  %s2110_s1 = sand.u32 (!%p346_p9), 1, %s1692_s18  }
  0x19   : > { %1549 = vmatprep.subr.msk.bf16.mxu1 (!%p346_p9), %vm579_vm0, %v442_v0  ;;  %v581_v1 = vsel (!%p346_p9), %vm579_vm0, %v442_v0, 0  ;;  %798 = vperm.xlu0 (!%p346_p9), %1598, %v794_v23  }
  0x1a   : > { %1480 = vmatpush3.bf16.msra.mxu1 %v581_v1  ;;  %s1817_s12 = scalar_select %p394_p10, %s1785_s21, 1  ;;  %v1866_v20 = vld [vmem:[%s2108_s3] sm:$0x3f]  }
  0x1b   : > { %v1879_v24 = vld [vmem:[%s2109_s2] ss:$0 sm:$0xff]  ;;  %s1222_s2 = scalar_lea.sflag [#allocation3], %s2110_s1 }
  0x1c   : > { %s1423_s13 = sshll.u32 %s1817_s12, 7 }
  0x1d   : > { %s1823_s16 = scalar_lea.vmem %s2107_s0, %s1423_s13  ;;  %s1244_s13 = sshll.u32 %s2017_s14, 4  ;;  %s1245_s13 = int_to_ptr.vmem [resolvable:$true] %s1244_s13 }
  0x1e   : > { %v1599_v2 = vld [vmem:[%s1823_s16] sm:$0xff]   ;;  %v1600_v3 = vld [vmem:[%s1823_s16 + $0x8] sm:$0xff]   ;;  %v1601_v4 = vld [vmem:[%s1823_s16 + $0x10] sm:$0xff]   ;;  %s2045_s0 = scalar_lea.hbm %s2096_s9, %s1420_s30  ;;  %s1638_s3 = scalar_lea.vmem %s1245_s13, 16 }
  0x1f   : > { %1481 = vmatprep.mubr.msk.bf16.mxu1 %vm530_vm1, %v1599_v2  ;;  %v1602_v5 = vld [vmem:[%s1823_s16 + $0x18] sm:$0xff]   ;;  %v1603_v6 = vld [vmem:[%s1823_s16 + $0x20] sm:$0xff]   ;;  %v1604_v7 = vld [vmem:[%s1823_s16 + $0x28] sm:$0xff]   ;;  %p1639_p11 = scmp.ne.s32.totalorder %s1245_s13, %s1638_s3 }
  0x20   : > { %1482 = vmatmul.mubr.msk.bf16.vlgmr.msra.gmra.mrb[0].mxu1 %vm530_vm1, %v1600_v3  ;;  %v1605_v8 = vld [vmem:[%s1823_s16 + $0x30] sm:$0xff]   ;;  %v1606_v9 = vld [vmem:[%s1823_s16 + $0x38] sm:$0xff]   ;;  %v1607_v10 = vld [vmem:[%s1823_s16 + $0x40] sm:$0xff]  }
  0x21   : > { %1485 = vmatprep.mubr.msk.bf16.mxu1 %vm530_vm1, %v1601_v4  ;;  %v1608_v11 = vld [vmem:[%s1823_s16 + $0x48] sm:$0xff]   ;;  %v1609_v12 = vld [vmem:[%s1823_s16 + $0x50] sm:$0xff]   ;;  %v1610_v13 = vld [vmem:[%s1823_s16 + $0x58] sm:$0xff]   ;;  %p1640_p12 = pnand %p1639_p11, %p1802_p5 }
  0x22   : > { %v1611_v14 = vld [vmem:[%s1823_s16 + $0x60] sm:$0xff]   ;;  %v1612_v15 = vld [vmem:[%s1823_s16 + $0x68] sm:$0xff]   ;;  %v1613_v16 = vld [vmem:[%s1823_s16 + $0x70] sm:$0xff]  }
  0x23   : > { %v1614_v17 = vld [vmem:[%s1823_s16 + $0x78] sm:$0xff]   ;;  %s1425_s16 = sshll.u32 %s1817_s12, 4  ;;  %p1641_p13 = pneg %p1640_p12 }
  0x24   : > { %s408_s25 = scalar_lea.vmem %s2098_s11, %s1425_s16  ;;  %s1703_s16 = smov [#allocation2]  }
  0x25   : > { %s1642_s22 = sshll.u32 %s1703_s16, 4  ;;  %s1643_s22 = int_to_ptr.vmem [resolvable:$false] %s1642_s22 }
  0x26   : > { %s1644_s24 = scalar_lea.vmem %s1643_s22, 32  ;;  %p1645_p0 = scmp.lt.s32.totalorder %s1245_s13, %s1643_s22 }
  0x27   : > { %p1646_p1 = scmp.lt.s32.totalorder %s1644_s24, %s1638_s3 }
  0x28   : > { %1486 = vmatmul.mubr.msk.bf16.gmra.mrb[4].mxu1 %vm530_vm1, %v1602_v5 }
  0x29   : > { %1489 = vmatprep.mubr.msk.bf16.mxu1 %vm530_vm1, %v1603_v6  ;;  %p1647_p2 = por %p1646_p1, %p1645_p0 }
  0x2b   : > { %p1648_p3 = pnand %p1647_p2, %p1641_p13 }
  0x30   : > { %1490 = vmatmul.mubr.msk.bf16.gmra.mrb[8].mxu1 %vm530_vm1, %v1604_v7 }
  0x31   : > { %1493 = vmatprep.mubr.msk.bf16.mxu1 %vm530_vm1, %v1605_v8 }
  0x38   : > { %1494 = vmatmul.mubr.msk.bf16.gmra.mrb[12].mxu1 %vm530_vm1, %v1606_v9 }
  0x39   : > { %1497 = vmatprep.mubr.msk.bf16.mxu1 %vm530_vm1, %v1607_v10 }
  0x40   : > { %1498 = vmatmul.mubr.msk.bf16.gmra.mrb[16].mxu1 %vm530_vm1, %v1608_v11 }
  0x41   : > { %1501 = vmatprep.mubr.msk.bf16.mxu1 %vm530_vm1, %v1609_v12 }
  0x48   : > { %1502 = vmatmul.mubr.msk.bf16.gmra.mrb[20].mxu1 %vm530_vm1, %v1610_v13 }
  0x49   : > { %1505 = vmatprep.mubr.msk.bf16.mxu1 %vm530_vm1, %v1611_v14 }
  0x50   : > { %1506 = vmatmul.mubr.msk.bf16.gmra.mrb[24].mxu1 %vm530_vm1, %v1612_v15 }
  0x51   : > { %1509 = vmatprep.mubr.msk.bf16.mxu1 %vm530_vm1, %v1613_v16 }
  0x58   : > { %1510 = vmatmul.mubr.msk.bf16.gmra.mrb[28].mxu1 %vm530_vm1, %v1614_v17 }
  0x59   : > { %1459 = vmatprep.mubr.msk.bf16.mxu1 %vm811_vm2, %v1866_v20 }
  0xf3   : > { %v1483_v25 = vpop.f32.mrb[0].mxu1 }
  0xf4   : > { %v626_v26 = vadd.f32 %v1483_v25, %v1879_v24  ;;  %v617_v27 = vpop.f32.mrb[1].mxu1 }
  0xf5   : > { %v618_v28 = vadd.f32 %v1879_v24, %v617_v27  ;;  %v1484_v29 = vpop.f32.mrb[2].mxu1 }
  0xf6   : > { %v629_v30 = vadd.f32 %v1484_v29, %v1879_v24  ;;  %v620_v31 = vpop.f32.mrb[3].mxu1  ;;  %v746_v33 = vmax.f32 %v626_v26, 0.0 }
  0xf7   : > { %v621_v32 = vadd.f32 %v1879_v24, %v620_v31  ;;  %v744_v35 = vmax.f32 %v618_v28, 0.0 }
  0xf8   : > { %v747_v34 = vmax.f32 %v629_v30, 0.0 }
  0xf9   : > { %v745_v36 = vmax.f32 %v621_v32, 0.0 }
  0xfa   : > { %v1885_v37 = vpack.c.bf16 %v747_v34, %v746_v33 }
  0xfb   : > { %v1487_v38 = vpop.f32.mrb[4].mxu1  ;;  %v1887_v39 = vpack.c.bf16 %v745_v36, %v744_v35 }
  0xfc   : > { %v642_v40 = vadd.f32 %v1487_v38, %v1879_v24  ;;  %v633_v41 = vpop.f32.mrb[5].mxu1 }
  0xfd   : > { %v634_v42 = vadd.f32 %v1879_v24, %v633_v41  ;;  %v1488_v43 = vpop.f32.mrb[6].mxu1  ;;  %1517 = vmatprep.mubr.msk.bf16.mxu0 %vm811_vm2, %v1887_v39 }
  0xfe   : > { %v645_v44 = vadd.f32 %v1488_v43, %v1879_v24  ;;  %v636_v45 = vpop.f32.mrb[7].mxu1  ;;  %1518 = vmatmul.mubr.msk.bf16.vlgmr.msra.gmra.mrb[0].mxu0 %vm811_vm2, %v1885_v37  ;;  %v750_v47 = vmax.f32 %v642_v40, 0.0  ;;  %v816_v40 = vsel %vm811_vm2, %v1887_v39, 0 }
  0xff   : > { %v637_v46 = vadd.f32 %v1879_v24, %v636_v45  ;;  %v748_v49 = vmax.f32 %v634_v42, 0.0 }
 0x100   : > { %v751_v48 = vmax.f32 %v645_v44, 0.0 }
 0x101   : > { %v749_v50 = vmax.f32 %v637_v46, 0.0 }
 0x102   : > { %v1897_v51 = vpack.c.bf16 %v751_v48, %v750_v47 }
 0x103   : > { %v1899_v52 = vpack.c.bf16 %v749_v50, %v748_v49  ;;  %v1491_v53 = vpop.f32.mrb[8].mxu1 }
 0x104   : > { %v658_v54 = vadd.f32 %v1491_v53, %v1879_v24  ;;  %v649_v55 = vpop.f32.mrb[9].mxu1 }
 0x105   : > { %v650_v56 = vadd.f32 %v1879_v24, %v649_v55  ;;  %v1492_v57 = vpop.f32.mrb[10].mxu1  ;;  %1521 = vmatprep.mubr.msk.bf16.mxu0 %vm811_vm2, %v1899_v52 }
 0x106   : > { %v661_v58 = vadd.f32 %v1492_v57, %v1879_v24  ;;  %v652_v59 = vpop.f32.mrb[11].mxu1  ;;  %1522 = vmatmul.mubr.msk.bf16.gmra.mrb[4].mxu0 %vm811_vm2, %v1897_v51  ;;  %v754_v61 = vmax.f32 %v658_v54, 0.0 }
 0x107   : > { %v653_v60 = vadd.f32 %v1879_v24, %v652_v59  ;;  %v752_v63 = vmax.f32 %v650_v56, 0.0  ;;  %v819_v56 = vsel %vm811_vm2, %v1885_v37, 0 }
 0x108   : > { %v755_v62 = vmax.f32 %v661_v58, 0.0 }
 0x109   : > { %v753_v0 = vmax.f32 %v653_v60, 0.0 }
 0x10a   : > { %v1909_v1 = vpack.c.bf16 %v755_v62, %v754_v61 }
 0x10b   : > { %v1911_v2 = vpack.c.bf16 %v753_v0, %v752_v63  ;;  %v1495_v3 = vpop.f32.mrb[12].mxu1 }
 0x10c   : > { %v674_v4 = vadd.f32 %v1495_v3, %v1879_v24  ;;  %v665_v5 = vpop.f32.mrb[13].mxu1 }
 0x10d   : > { %v666_v6 = vadd.f32 %v1879_v24, %v665_v5  ;;  %v1496_v7 = vpop.f32.mrb[14].mxu1  ;;  %1525 = vmatprep.mubr.msk.bf16.mxu0 %vm811_vm2, %v1911_v2 }
 0x10e   : > { %v677_v8 = vadd.f32 %v1496_v7, %v1879_v24  ;;  %v668_v9 = vpop.f32.mrb[15].mxu1  ;;  %1526 = vmatmul.mubr.msk.bf16.gmra.mrb[8].mxu0 %vm811_vm2, %v1909_v1  ;;  %v758_v11 = vmax.f32 %v674_v4, 0.0 }
 0x10f   : > { %v669_v10 = vadd.f32 %v1879_v24, %v668_v9  ;;  %v756_v13 = vmax.f32 %v666_v6, 0.0 }
 0x110   : > { %v759_v12 = vmax.f32 %v677_v8, 0.0  ;;  %v822_v8 = vsel %vm811_vm2, %v1899_v52, 0  ;;  %v825_v52 = vsel %vm811_vm2, %v1897_v51, 0 }
 0x111   : > { %v757_v14 = vmax.f32 %v669_v10, 0.0 }
 0x112   : > { %v1921_v15 = vpack.c.bf16 %v759_v12, %v758_v11 }
 0x113   : > { %v1923_v16 = vpack.c.bf16 %v757_v14, %v756_v13  ;;  %v1499_v17 = vpop.f32.mrb[16].mxu1 }
 0x114   : > { %v690_v18 = vadd.f32 %v1499_v17, %v1879_v24  ;;  %v681_v19 = vpop.f32.mrb[17].mxu1 }
 0x115   : > { %v682_v21 = vadd.f32 %v1879_v24, %v681_v19  ;;  %v1500_v22 = vpop.f32.mrb[18].mxu1  ;;  %1529 = vmatprep.mubr.msk.bf16.mxu0 %vm811_vm2, %v1923_v16  ;;  %v834_v51 = vsel %vm811_vm2, %v1923_v16, 0 }
 0x116   : > { %v693_v23 = vadd.f32 %v1500_v22, %v1879_v24  ;;  %v684_v25 = vpop.f32.mrb[19].mxu1  ;;  %1530 = vmatmul.mubr.msk.bf16.gmra.mrb[12].mxu0 %vm811_vm2, %v1921_v15  ;;  %v762_v27 = vmax.f32 %v690_v18, 0.0  ;;  %v837_v22 = vsel %vm811_vm2, %v1921_v15, 0 }
 0x117   : > { %v685_v26 = vadd.f32 %v1879_v24, %v684_v25  ;;  %v760_v29 = vmax.f32 %v682_v21, 0.0  ;;  %v828_v21 = vsel %vm811_vm2, %v1911_v2, 0 }
 0x118   : > { %v763_v28 = vmax.f32 %v693_v23, 0.0 }
 0x119   : > { %v761_v30 = vmax.f32 %v685_v26, 0.0 }
 0x11a   : > { %v785_v31 = vpack.c.bf16 %v763_v28, %v762_v27 }
 0x11b   : > { %v784_v32 = vpack.c.bf16 %v761_v30, %v760_v29  ;;  %v1503_v33 = vpop.f32.mrb[20].mxu1 }
 0x11c   : > { %v706_v34 = vadd.f32 %v1503_v33, %v1879_v24  ;;  %v697_v35 = vpop.f32.mrb[21].mxu1 }
 0x11d   : > { %v698_v36 = vadd.f32 %v1879_v24, %v697_v35  ;;  %v1504_v38 = vpop.f32.mrb[22].mxu1  ;;  %1550 = vmatprep.subr.msk.bf16.mxu1 %vm811_vm2, %v784_v32  ;;  %1533 = vmatprep.mubr.msk.bf16.mxu0 %vm811_vm2, %v784_v32 }
 0x11e   : > { %v766_v41 = vmax.f32 %v706_v34, 0.0  ;;  %v709_v42 = vadd.f32 %v1504_v38, %v1879_v24  ;;  %v700_v43 = vpop.f32.mrb[23].mxu1  ;;  %1444 = vmatpush3.bf16.xpose.msra.mxu1 %v816_v40  ;;  %1534 = vmatmul.mubr.msk.bf16.gmra.mrb[16].mxu0 %vm811_vm2, %v785_v31 }
 0x11f   : > { %v764_v44 = vmax.f32 %v698_v36, 0.0  ;;  %v701_v45 = vadd.f32 %v1879_v24, %v700_v43  ;;  %1551 = vmatprep.subr.msk.bf16.mxu1 %vm811_vm2, %v785_v31 }
 0x120   : > { %v767_v46 = vmax.f32 %v709_v42, 0.0 }
 0x121   : > { %v765_v47 = vmax.f32 %v701_v45, 0.0 }
 0x122   : > { %v787_v48 = vpack.c.bf16 %v767_v46, %v766_v41 }
 0x123   : > { %v786_v49 = vpack.c.bf16 %v765_v47, %v764_v44  ;;  %v1507_v50 = vpop.f32.mrb[24].mxu1 }
 0x124   : > { %v722_v53 = vadd.f32 %v1507_v50, %v1879_v24  ;;  %v713_v39 = vpop.f32.mrb[25].mxu1 }
 0x125   : > { %v714_v54 = vadd.f32 %v1879_v24, %v713_v39  ;;  %v1508_v55 = vpop.f32.mrb[26].mxu1  ;;  %1537 = vmatprep.mubr.msk.bf16.mxu0 %vm811_vm2, %v786_v49 }
 0x126   : > { %v770_v57 = vmax.f32 %v722_v53, 0.0  ;;  %v725_v58 = vadd.f32 %v1508_v55, %v1879_v24  ;;  %v716_v59 = vpop.f32.mrb[27].mxu1  ;;  %1446 = vmatpush3.bf16.xpose.msra.mxu1 %v819_v56  ;;  %1538 = vmatmul.mubr.msk.bf16.gmra.mrb[20].mxu0 %vm811_vm2, %v787_v48 }
 0x127   : > { %v768_v60 = vmax.f32 %v714_v54, 0.0  ;;  %v717_v61 = vadd.f32 %v1879_v24, %v716_v59  ;;  %1552 = vmatprep.subr.msk.bf16.mxu1 %vm811_vm2, %v786_v49 }
 0x128   : > { %v771_v62 = vmax.f32 %v725_v58, 0.0 }
 0x129   : > { %v769_v63 = vmax.f32 %v717_v61, 0.0 }
 0x12a   : > { %v789_v0 = vpack.c.bf16 %v771_v62, %v770_v57 }
 0x12b   : > { %v788_v3 = vpack.c.bf16 %v769_v63, %v768_v60  ;;  %v1511_v4 = vpop.f32.mrb[28].mxu1 }
 0x12c   : > { %v738_v5 = vadd.f32 %v1511_v4, %v1879_v24  ;;  %v729_v37 = vpop.f32.mrb[29].mxu1 }
 0x12d   : > { %v730_v6 = vadd.f32 %v1879_v24, %v729_v37  ;;  %v1512_v7 = vpop.f32.mrb[30].mxu1  ;;  %1541 = vmatprep.mubr.msk.bf16.mxu0 %vm811_vm2, %v788_v3 }
 0x12e   : > { %v774_v9 = vmax.f32 %v738_v5, 0.0  ;;  %v741_v10 = vadd.f32 %v1512_v7, %v1879_v24  ;;  %v732_v11 = vpop.f32.mrb[31].mxu1  ;;  %1448 = vmatpush3.bf16.xpose.msra.mxu1 %v822_v8  ;;  %1542 = vmatmul.mubr.msk.bf16.gmra.mrb[24].mxu0 %vm811_vm2, %v789_v0 }
 0x12f   : > { %v772_v12 = vmax.f32 %v730_v6, 0.0  ;;  %v733_v13 = vadd.f32 %v1879_v24, %v732_v11  ;;  %1553 = vmatprep.subr.msk.bf16.mxu1 %vm811_vm2, %v787_v48  ;;  %v831_v24 = vsel %vm811_vm2, %v1909_v1, 0 }
 0x130   : > { %v775_v14 = vmax.f32 %v741_v10, 0.0 }
 0x131   : > { %v773_v17 = vmax.f32 %v733_v13, 0.0 }
 0x132   : > { %v791_v18 = vpack.c.bf16 %v775_v14, %v774_v9 }
 0x133   : > { %v790_v19 = vpack.c.bf16 %v773_v17, %v772_v12 }
 0x135   : > { %1545 = vmatprep.mubr.msk.bf16.mxu0 %vm811_vm2, %v790_v19 }
 0x136   : > { %1450 = vmatpush3.bf16.xpose.msra.mxu1 %v825_v52  ;;  %1546 = vmatmul.mubr.msk.bf16.gmra.mrb[28].mxu0 %vm811_vm2, %v791_v18 }
 0x137   : > { %1554 = vmatprep.subr.msk.bf16.mxu1 %vm811_vm2, %v788_v3 }
 0x13e   : > { %1452 = vmatpush3.bf16.xpose.msra.mxu1 %v828_v21 }
 0x13f   : > { %1555 = vmatprep.subr.msk.bf16.mxu1 %vm811_vm2, %v789_v0 }
 0x146   : > { %1454 = vmatpush3.bf16.xpose.msra.mxu1 %v831_v24 }
 0x147   : > { %1556 = vmatprep.subr.msk.bf16.mxu1 %vm811_vm2, %v790_v19 }
 0x14e   : > { %1456 = vmatpush3.bf16.xpose.msra.mxu1 %v834_v51 }
 0x14f   : > { %1557 = vmatprep.subr.msk.bf16.mxu1 %vm811_vm2, %v791_v18 }
 0x156   : > { %1458 = vmatpush3.bf16.xpose.msra.mxu1 %v837_v22 }
 0x15d   : > { %1460 = vmatmul.mubr.msk.bf16.vlgmr.msra.gmra.mrb[32].mxu1 %vm811_vm2, %v1866_v20 }
 0x1d1   : > { %v1519_v2 = vpop.f32.mrb[0].mxu0 }
 0x1d2   : > { %v1019_v23 = vpop.f32.mrb[1].mxu0  ;;  %v1149_v16 = vsel %vm530_vm1, %v1519_v2, 0.0 }
 0x1d3   : > { %v1520_v25 = vpop.f32.mrb[2].mxu0  ;;  %v1146_v26 = vsel %vm530_vm1, %v1019_v23, 0.0 }
 0x1d4   : > { %v1022_v1 = vpop.f32.mrb[3].mxu0  ;;  %v1151_v30 = vsel %vm530_vm1, %v1520_v25, 0.0 }
 0x1d5   : > { %v1147_v27 = vsel %vm530_vm1, %v1022_v1, 0.0 }
 0x1d6   : > { %v1148_v28 = vadd.f32 %v1147_v27, %v1146_v26 }
 0x1d8   : > { %v1150_v29 = vadd.f32 %v1149_v16, %v1148_v28 }
 0x1d9   : > { %v1523_v31 = vpop.f32.mrb[4].mxu0 }
 0x1da   : > { %v1035_v15 = vpop.f32.mrb[5].mxu0  ;;  %v1152_v32 = vadd.f32 %v1151_v30, %v1150_v29  ;;  %v1157_v40 = vsel %vm530_vm1, %v1523_v31, 0.0 }
 0x1db   : > { %v1153_v33 = vsel %vm530_vm1, %v1035_v15, 0.0  ;;  %v1524_v20 = vpop.f32.mrb[6].mxu0 }
 0x1dc   : > { %v1154_v34 = vadd.f32 %v1153_v33, %v1152_v32  ;;  %v1038_v35 = vpop.f32.mrb[7].mxu0  ;;  %v1159_v42 = vsel %vm530_vm1, %v1524_v20, 0.0 }
 0x1dd   : > { %v1155_v36 = vsel %vm530_vm1, %v1038_v35, 0.0 }
 0x1de   : > { %v1156_v38 = vadd.f32 %v1155_v36, %v1154_v34 }
 0x1e0   : > { %v1158_v41 = vadd.f32 %v1157_v40, %v1156_v38 }
 0x1e1   : > { %v1527_v43 = vpop.f32.mrb[8].mxu0 }
 0x1e2   : > { %v1051_v44 = vpop.f32.mrb[9].mxu0  ;;  %v1160_v45 = vadd.f32 %v1159_v42, %v1158_v41  ;;  %v1165_v39 = vsel %vm530_vm1, %v1527_v43, 0.0 }
 0x1e3   : > { %v1161_v46 = vsel %vm530_vm1, %v1051_v44, 0.0  ;;  %v1528_v47 = vpop.f32.mrb[10].mxu0 }
 0x1e4   : > { %v1162_v48 = vadd.f32 %v1161_v46, %v1160_v45  ;;  %v1054_v49 = vpop.f32.mrb[11].mxu0  ;;  %v1167_v55 = vsel %vm530_vm1, %v1528_v47, 0.0 }
 0x1e5   : > { %v1163_v50 = vsel %vm530_vm1, %v1054_v49, 0.0 }
 0x1e6   : > { %v1164_v53 = vadd.f32 %v1163_v50, %v1162_v48 }
 0x1e8   : > { %v1166_v54 = vadd.f32 %v1165_v39, %v1164_v53 }
 0x1e9   : > { %v1531_v56 = vpop.f32.mrb[12].mxu0 }
 0x1ea   : > { %v1067_v57 = vpop.f32.mrb[13].mxu0  ;;  %v1168_v58 = vadd.f32 %v1167_v55, %v1166_v54  ;;  %v1173_v3 = vsel %vm530_vm1, %v1531_v56, 0.0 }
 0x1eb   : > { %v1169_v59 = vsel %vm530_vm1, %v1067_v57, 0.0  ;;  %v1532_v60 = vpop.f32.mrb[14].mxu0 }
 0x1ec   : > { %v1170_v61 = vadd.f32 %v1169_v59, %v1168_v58  ;;  %v1070_v62 = vpop.f32.mrb[15].mxu0  ;;  %v1175_v5 = vsel %vm530_vm1, %v1532_v60, 0.0  ;;  %v1217_v59 = vld [vmem:[%s2095_s8] sm:$0x1] }
 0x1ed   : > { %v1171_v63 = vsel %vm530_vm1, %v1070_v62, 0.0  ;;  %v804_v62 = vpop.permute.xlu0 %803 }
 0x1ee   : > { %v1172_v0 = vadd.f32 %v1171_v63, %v1170_v61 }
 0x1f0   : > { %v1174_v4 = vadd.f32 %v1173_v3, %v1172_v0 }
 0x1f1   : > { %v1535_v37 = vpop.f32.mrb[16].mxu0 }
 0x1f2   : > { %v1083_v6 = vpop.f32.mrb[17].mxu0  ;;  %v1176_v7 = vadd.f32 %v1175_v5, %v1174_v4  ;;  %v1181_v14 = vsel %vm530_vm1, %v1535_v37, 0.0  ;;  %v799_v37 = vpop.permute.xlu0 %798 }
 0x1f3   : > { %v1177_v8 = vsel %vm530_vm1, %v1083_v6, 0.0  ;;  %v1536_v9 = vpop.f32.mrb[18].mxu0 }
 0x1f4   : > { %v1178_v10 = vadd.f32 %v1177_v8, %v1176_v7  ;;  %v1086_v11 = vpop.f32.mrb[19].mxu0  ;;  %v1183_v18 = vsel %vm530_vm1, %v1536_v9, 0.0 }
 0x1f5   : > { %v1179_v12 = vsel %vm530_vm1, %v1086_v11, 0.0 }
 0x1f6   : > { %v1180_v13 = vadd.f32 %v1179_v12, %v1178_v10 }
 0x1f8   : > { %v1182_v17 = vadd.f32 %v1181_v14, %v1180_v13  ;;  %v946_v13 = vld [vmem:[%s2092_s5 + $0x8] sm:$0xf] }
 0x1f9   : > { %v1539_v19 = vpop.f32.mrb[20].mxu0  ;;  %v950_v14 = vld [vmem:[%s2093_s6 + $0x8] sm:$0xf] }
 0x1fa   : > { %v1099_v52 = vpop.f32.mrb[21].mxu0  ;;  %v1184_v21 = vadd.f32 %v1183_v18, %v1182_v17  ;;  %v1189_v23 = vsel %vm530_vm1, %v1539_v19, 0.0 }
 0x1fb   : > { %v1185_v24 = vsel %vm530_vm1, %v1099_v52, 0.0  ;;  %v1540_v51 = vpop.f32.mrb[22].mxu0 }
 0x1fc   : > { %v1186_v22 = vadd.f32 %v1185_v24, %v1184_v21  ;;  %v1102_v2 = vpop.f32.mrb[23].mxu0  ;;  %v1191_v27 = vsel %vm530_vm1, %v1540_v51, 0.0 }
 0x1fd   : > { %v1187_v25 = vsel %vm530_vm1, %v1102_v2, 0.0 }
 0x1fe   : > { %v1188_v1 = vadd.f32 %v1187_v25, %v1186_v22  ;;  %v945_v22 = vld [vmem:[%s2092_s5] sm:$0xff] }
 0x1ff   : > { %v949_v25 = vld [vmem:[%s2093_s6] sm:$0xff] }
 0x200   : > { %v1190_v26 = vadd.f32 %v1189_v23, %v1188_v1 }
 0x201   : > { %v1543_v28 = vpop.f32.mrb[24].mxu0 }
 0x202   : > { %v1115_v16 = vpop.f32.mrb[25].mxu0  ;;  %v1192_v29 = vadd.f32 %v1191_v27, %v1190_v26  ;;  %v1197_v33 = vsel %vm530_vm1, %v1543_v28, 0.0 }
 0x203   : > { %v1193_v30 = vsel %vm530_vm1, %v1115_v16, 0.0  ;;  %v1544_v31 = vpop.f32.mrb[26].mxu0 }
 0x204   : > { %v1194_v15 = vadd.f32 %v1193_v30, %v1192_v29  ;;  %v1118_v32 = vpop.f32.mrb[27].mxu0  ;;  %v1199_v35 = vsel %vm530_vm1, %v1544_v31, 0.0 }
 0x205   : > { %v1195_v20 = vsel %vm530_vm1, %v1118_v32, 0.0 }
 0x206   : > { %v1196_v34 = vadd.f32 %v1195_v20, %v1194_v15 }
 0x208   : > { %v1198_v36 = vadd.f32 %v1197_v33, %v1196_v34 }
 0x209   : > { %v1547_v38 = vpop.f32.mrb[28].mxu0 }
 0x20a   : > { %v1131_v40 = vpop.f32.mrb[29].mxu0  ;;  %v1200_v41 = vadd.f32 %v1199_v35, %v1198_v36  ;;  %v1205_v46 = vsel %vm530_vm1, %v1547_v38, 0.0 }
 0x20b   : > { %v1201_v42 = vsel %vm530_vm1, %v1131_v40, 0.0  ;;  %v1548_v43 = vpop.f32.mrb[30].mxu0 }
 0x20c   : > { %v1202_v44 = vadd.f32 %v1201_v42, %v1200_v41  ;;  %v1134_v45 = vpop.f32.mrb[31].mxu0  ;;  %v1207_v49 = vsel %vm530_vm1, %v1548_v43, 0.0 }
 0x20d   : > { %v1203_v47 = vsel %vm530_vm1, %v1134_v45, 0.0 }
 0x20e   : > { %v1204_v48 = vadd.f32 %v1203_v47, %v1202_v44 }
 0x210   : > { %v1206_v50 = vadd.f32 %v1205_v46, %v1204_v48 }
 0x212   : > { %v1208_v53 = vadd.f32 %v1207_v49, %v1206_v50 }
 0x214   : > { %v1209_v39 = vrot.slane %v1208_v53, 4 }
 0x216   : > { %v1210_v54 = vadd.f32 %v1209_v39, %v1208_v53 }
 0x218   : > { %v1211_v55 = vrot.slane %v1210_v54, 2 }
 0x21a   : > { %v1212_v56 = vadd.f32 %v1211_v55, %v1210_v54 }
 0x21c   : > { %v1213_v57 = vrot.slane %v1212_v56, 1 }
 0x21e   : > { %v1214_v58 = vadd.f32 %v1213_v57, %v1212_v56 }
 0x220   : > { %v1216_v60 = vmul.f32 0.00390625, %v1214_v58 }
 0x222   : > { %v1218_v61 = vadd.f32 %v1217_v59, %v1216_v60 }
 0x224   : > { %1220 = vst.msk [vmem:[%s2017_s14] sm:$0x1] %vm1219_vm3, %v1218_v61 }
 0x230   : > { %v897_v63 = vpop.f32.mrb[32].mxu1 }
 0x231   : > { %v899_v0 = vpop.f32.mrb[33].mxu1  ;;  %v898_v9 = vadd.f32 %v897_v63, %v799_v37 }
 0x232   : > { %v901_v3 = vpop.f32.mrb[34].mxu1  ;;  %v900_v10 = vadd.f32 %v899_v0, %v799_v37 }
 0x233   : > { %v902_v4 = vadd.f32 %v901_v3, %v804_v62  ;;  %v903_v5 = vpop.f32.mrb[35].mxu1 }
 0x234   : > { %v904_v6 = vadd.f32 %v903_v5, %v804_v62  ;;  %v906_v12 = vmax.f32 %v898_v9, %v900_v10 }
 0x235   : > { %v910_v7 = vsel %vm909_vm4, %v902_v4, -inf }
 0x236   : > { %v911_v8 = vsel %vm909_vm4, %v904_v6, -inf }
 0x237   : > { %v912_v11 = vmax.f32 %v910_v7, %v911_v8 }
 0x239   : > { %913 = vmax.xlane.f32.xlu1 %v912_v11 }
 0x23d   : > { %907 = vmax.xlane.f32.xlu1 %v906_v12 }
 0x2c6   : > { %v914_v17 = vpop.xlane.xlu1 %913 }
 0x2c7   : > { %v917_v18 = vsub.f32 %v902_v4, %v914_v17  ;;  %v918_v19 = vsub.f32 %v904_v6, %v914_v17  ;;  %v948_v52 = vsub.f32 %v914_v17, %v946_v13 }
 0x2c9   : > { %v923_v21 = vmul.f32 1.442695, %v917_v18  ;;  %v925_v24 = vmul.f32 1.442695, %v918_v19  ;;  %v952_v51 = vmul.f32 %v950_v14, %v948_v52 }
 0x2ca   : > { %v908_v2 = vpop.xlane.xlu1 %907 }
 0x2cb   : > { %1618 = vpow2.f32 %v923_v21  ;;  %v1401_v23 = vmul.f32 -1.442695, %v952_v51  ;;  %v915_v1 = vsub.f32 %v898_v9, %v908_v2  ;;  %v916_v26 = vsub.f32 %v900_v10, %v908_v2 }
 0x2cc   : > { %1620 = vpow2.f32 %v925_v24  ;;  %v947_v27 = vsub.f32 %v908_v2, %v945_v22 }
 0x2cd   : > { %1622 = vpow2.f32 %v1401_v23  ;;  %v919_v28 = vmul.f32 1.442695, %v915_v1  ;;  %v921_v16 = vmul.f32 1.442695, %v916_v26 }
 0x2ce   : > { %v951_v29 = vmul.f32 %v949_v25, %v947_v27 }
 0x2cf   : > { %1624 = vpow2.f32 %v919_v28 }
 0x2d0   : > { %1626 = vpow2.f32 %v921_v16  ;;  %v1400_v30 = vmul.f32 -1.442695, %v951_v29 }
 0x2d2   : > { %1628 = vpow2.f32 %v1400_v30 }
 0x2d5   : > { %v1619_v31 = vpop.eup %1618 }
 0x2d6   : > { %v1621_v15 = vpop.eup %1620  ;;  %v930_v32 = vsel %vm909_vm4, %v1619_v31, 0.0 }
 0x2d7   : > { %v1623_v33 = vpop.eup %1622  ;;  %v931_v20 = vsel %vm909_vm4, %v1621_v15, 0.0 }
 0x2d8   : > { %v960_v34 = vadd.f32 1.0, %v1623_v33  ;;  %v932_v35 = vadd.f32 %v931_v20, %v930_v32 }
 0x2d9   : > { %v1625_v36 = vpop.eup %1624 }
 0x2da   : > { %v1627_v38 = vpop.eup %1626  ;;  %1630 = vrcp.f32 %v960_v34  ;;  %933 = vadd.xlane.f32.xlu1 %v932_v35 }
 0x2db   : > { %v927_v40 = vadd.f32 %v1627_v38, %v1625_v36 }
 0x2dc   : > { %v1629_v41 = vpop.eup %1628 }
 0x2dd   : > { %v959_v42 = vadd.f32 1.0, %v1629_v41  ;;  %928 = vadd.xlane.f32.xlu0 %v927_v40 }
 0x2df   : > { %1632 = vrcp.f32 %v959_v42 }
 0x2e4   : > { %v1631_v43 = vpop.eup %1630 }
 0x2e5   : > { %968 = vst.msk [vmem:[%s408_s25 + $0x8] sm:$0xf] %vm967_vm5, %v1631_v43 }
 0x2e9   : > { %v1633_v44 = vpop.eup %1632 }
 0x2ea   : > { %966 = vst.msk [vmem:[%s408_s25] sm:$0xff] %vm965_vm6, %v1633_v44 }
 0x2eb   : > { %1651 = shalt.err (!%p1648_p3)
}
 0x2ec   : > { %s1652_s1 = scalar_lea.hbm %s2045_s0, 16  ;;  %s1656_s14 = scalar_lea.hbm %s2096_s9, 32 }
 0x2ed   : > { %p1653_p4 = scmp.ne.s32.totalorder %s2045_s0, %s1652_s1  ;;  %p1657_p9 = scmp.lt.u32.totalorder %s2045_s0, %s2096_s9 }
 0x2ee   : > { %p1658_p10 = scmp.lt.u32.totalorder %s1656_s14, %s1652_s1  ;;  %p1660_p12 = scmp.lt.u32.totalorder %s1652_s1, %s2045_s0 }
 0x2ef   : > { %p1654_p7 = pnand %p1653_p4, %p1802_p5 }
 0x2f0   : > { %p1659_p11 = por %p1658_p10, %p1657_p9 }
 0x2f1   : > { %p1655_p8 = pneg %p1654_p7 }
 0x2f2   : > { %p1661_p13 = por %p1660_p12, %p1659_p11 }
 0x2f4   : > { %p1662_p0 = pnand %p1661_p13, %p1655_p8 }
 0x2f6   : > { %1665 = shalt.err (!%p1662_p0)
}
 0x2f7   : > { %1558 = dma.vmem_to_hbm [thread:$0]  (%p1802_p5), %s1245_s13, 16, %s2045_s0, %s1222_s2  }
 0x2f8   : > { %s1424_s3 = sshll.u32 %s1817_s12, 5 }
 0x2f9   : > { %s403_s22 = scalar_lea.vmem %s2097_s10, %s1424_s3 }
 0x367   : > { %v934_v45 = vpop.xlane.xlu1 %933 }
 0x368   : > { %1634 = vrcp.f32 %v934_v45 }
 0x36a   : > { %v929_v46 = vpop.xlane.xlu0 %928 }
 0x36b   : > { %1636 = vrcp.f32 %v929_v46 }
 0x372   : > { %v1635_v47 = vpop.eup %1634 }
 0x373   : > { %v939_v48 = vmul.f32 %v1635_v47, %v1619_v31  ;;  %v940_v49 = vmul.f32 %v1635_v47, %v1621_v15 }
 0x375   : > { %v1637_v50 = vpop.eup %1636  ;;  %943 = vst [vmem:[%s403_s22 + $0x10] sm:$0xf] %v939_v48  ;;  %944 = vst [vmem:[%s403_s22 + $0x18] sm:$0xf] %v940_v49 }
 0x376   : > { %v937_v53 = vmul.f32 %v1637_v50, %v1625_v36  ;;  %v938_v39 = vmul.f32 %v1637_v50, %v1627_v38 }
 0x378   : > { %941 = vst [vmem:[%s403_s22] sm:$0xff] %v937_v53  ;;  %942 = vst [vmem:[%s403_s22 + $0x8] sm:$0xff] %v938_v39 }
 0x379 PF: > { %p1564_p5 = scmp.ge.s32.totalorder %s1700_s20, 2  ;;  %s1262_s0 = sand.u32 1, %s1688_s17  }
 0x37a   : > { %s1263_s2 = scalar_lea.sflag [#allocation3], %s1262_s0 }
 0x37b   : > { %p1561_p1 = pnand %p1564_p5, %p1806_p6 }
 0x37d   : > { %1683 = dma.done.wait (!%p1561_p1), %s1263_s2, 16  }
 0x37e   : > { %1685 = vsyncadd (!%p1561_p1), %s1263_s2, 4294967280  ;;  %p22_p2 = scmp.ge.s32.totalorder %s1789_s23, 4   ;;  %s2111_s17 = smov %s1692_s18 }
 0x37f   : > { %s2112_s18 = smov %s1696_s19  ;;  %s2113_s19 = smov %s1800_s26 }
 0x380   : > { %s2114_s20 = smov %s1789_s23  ;;  %24 = sbr.rel (!%p22_p2) target bundleno = 8 (0x8), region = 115 }
 0x387   :  { %1283 = vsyncpa [#allocation3], 1 }
 0x388   :  { %1285 = vsyncpa [#allocation3 + $0x1], 1 }

</bundles_post_ra>
